<compile_context>
chip_gen: v7x
topology: tpu7x:2x2x1
jax: 0.10.0
libtpu: 0.0.40
codegen_flags: <defaults>
</compile_context>

<pallas_src>
import math

import jax
import jax.numpy as jnp
from jax import lax
from jax.experimental import pallas as pl
from jax.experimental.pallas import tpu as pltpu

LANE = 128


def _round_up(v, m):
    return (v + m - 1) // m * m


def _vmem_limit_bytes():
    # ~108 MiB on 128-MiB parts (v5e/v6e), 48 MiB on v7x's 64-MiB VMEM.
    try:
        cap = int(pltpu.get_tpu_info().vmem_capacity_bytes)
    except Exception:
        cap = 64 * 1024 * 1024          # conservative (v7x-sized) fallback
    return int(min(cap - 16 * 1024 * 1024, int(cap * 0.85)))


_VMEM_LIMIT = _vmem_limit_bytes()

_LAYER_PARAMS = pltpu.CompilerParams(
    dimension_semantics=("parallel",),   # row tiles independent -> both TCs on v7x
    vmem_limit_bytes=_VMEM_LIMIT,
)
_HEAD_PARAMS = pltpu.CompilerParams(
    dimension_semantics=("arbitrary",),
    vmem_limit_bytes=_VMEM_LIMIT,
)


def _full_spec(shape):
    zeros = (0,) * len(shape)
    return pl.BlockSpec(shape, lambda i, _z=zeros: _z)


def _pad_and_tile(n):
    """Pad node count (32 = int8 sublane packing) and choose an A row tile."""
    n_pad = _round_up(n, 32)
    if n_pad <= 512:
        return n_pad, n_pad              # single full-array tile: optimal at small N
    t = 512                              # 256-aligned for the v6e/v7x 2x256x256 MXU
    # per-tile A footprint ~ T*N*(1B int8, double-buffered, + 2B bf16 copy in regs)
    while t > 256 and 2 * t * n_pad * 3 > _VMEM_LIMIT // 2:
        t //= 2
    n_pad = _round_up(n_pad, t)
    return n_pad, t


# ----------------------------------------------------------------------------
# Pallas kernels
# ----------------------------------------------------------------------------
def _make_conv_kernel(row_tile):
    def kernel(a_ref, x_ref, invdeg_ref, wrel_ref, wroot_ref, brel_ref, wsrel_ref,
               h_ref, hw_ref):
        a = a_ref[...].astype(jnp.bfloat16)                 # (T, Np) int8 -> bf16
        x = x_ref[...]                                      # (Np, CP) bf16, resident
        # GraphConv(aggr='mean'): exact precomputed 1/deg, f32 accumulation
        agg = jnp.dot(a, x, preferred_element_type=jnp.float32) * invdeg_ref[...]
        r0 = pl.multiple_of(pl.program_id(0) * row_tile, 8)
        x_tile = x_ref[pl.ds(r0, row_tile), :]              # this tile's root term
        h = jnp.dot(agg.astype(jnp.bfloat16), wrel_ref[...],
                    preferred_element_type=jnp.float32)
        h = h + jnp.dot(x_tile, wroot_ref[...], preferred_element_type=jnp.float32)
        h = jnp.maximum(h + brel_ref[...], 0.0)             # relu, (T, HP) f32
        h_bf = h.astype(jnp.bfloat16)
        h_ref[...] = h_bf
        # scoring GraphConv reassociated: A @ (h @ ws_rel); emit hw for pass 2
        hw_ref[...] = jnp.dot(h_bf, wsrel_ref[...],
                              preferred_element_type=jnp.float32).astype(jnp.bfloat16)
    return kernel


def _make_score_kernel(score_col):
    def kernel(a_ref, hw_ref, h_ref, wsroot_ref, bs_ref, xs_ref):
        a = a_ref[...].astype(jnp.bfloat16)                 # (T, Np) int8 -> bf16
        h = h_ref[...]                                      # (T, HP) bf16
        s = jnp.dot(a, hw_ref[...], preferred_element_type=jnp.float32)
        s = s + jnp.dot(h, wsroot_ref[...], preferred_element_type=jnp.float32)
        s = jnp.tanh(s + bs_ref[...])                       # (T, LANE); col 0 = score
        score = s[:, 0:1]                                   # (T, 1) f32
        xs = h.astype(jnp.float32) * score                  # SAGPooling x * score
        col = lax.broadcasted_iota(jnp.int32, xs.shape, 1)
        xs = jnp.where(col == score_col, score, xs)         # stash score in padded lane
        xs_ref[...] = xs.astype(jnp.bfloat16)
    return kernel


def fused_layer(a_i8, x_bf, inv_deg, p, *, row_tile, score_col):
    n_pad, cp = x_bf.shape
    hp = p["w_rel"].shape[1]
    rt = n_pad // row_tile

    h, hw = pl.pallas_call(
        _make_conv_kernel(row_tile),
        grid=(rt,),
        in_specs=[
            pl.BlockSpec((row_tile, n_pad), lambda r: (r, 0)),   # A row tile (int8)
            pl.BlockSpec((n_pad, cp), lambda r: (0, 0)),         # x resident
            pl.BlockSpec((row_tile, 1), lambda r: (r, 0)),       # 1/deg row tile
            _full_spec(p["w_rel"].shape),
            _full_spec(p["w_root"].shape),
            _full_spec(p["b_rel"].shape),
            _full_spec(p["ws_rel"].shape),
        ],
        out_specs=(pl.BlockSpec((row_tile, hp), lambda r: (r, 0)),
                   pl.BlockSpec((row_tile, LANE), lambda r: (r, 0))),
        out_shape=(jax.ShapeDtypeStruct((n_pad, hp), jnp.bfloat16),
                   jax.ShapeDtypeStruct((n_pad, LANE), jnp.bfloat16)),
        compiler_params=_LAYER_PARAMS,
    )(a_i8, x_bf, inv_deg, p["w_rel"], p["w_root"], p["b_rel"], p["ws_rel"])

    xs = pl.pallas_call(
        _make_score_kernel(score_col),
        grid=(rt,),
        in_specs=[
            pl.BlockSpec((row_tile, n_pad), lambda r: (r, 0)),   # A row tile (int8)
            pl.BlockSpec((n_pad, LANE), lambda r: (0, 0)),       # hw resident
            pl.BlockSpec((row_tile, hp), lambda r: (r, 0)),      # h row tile
            _full_spec(p["ws_root"].shape),
            _full_spec(p["bs"].shape),
        ],
        out_specs=pl.BlockSpec((row_tile, hp), lambda r: (r, 0)),
        out_shape=jax.ShapeDtypeStruct((n_pad, hp), jnp.bfloat16),
        compiler_params=_LAYER_PARAMS,
    )(a_i8, hw, h, p["ws_root"], p["bs"])
    return xs


def _make_head_kernel(num_layers, hp):
    def kernel(*refs):
        xs_refs = refs[:num_layers]
        w1_ref, b1_ref, w2_ref, b2_ref, o_ref = refs[num_layers:]
        acc = None
        for l in range(num_layers):
            # global_max_pool: graphs are contiguous equal-sized -> sublane reduce
            g = jnp.max(xs_refs[l][...], axis=1)                 # (G, HP) bf16
            w1_l = w1_ref[l * hp:(l + 1) * hp, :]                # static, 128-aligned
            d = jnp.dot(g, w1_l, preferred_element_type=jnp.float32)
            acc = d if acc is None else acc + d
        h1 = jnp.maximum(acc + b1_ref[...], 0.0)                 # lin1 + relu
        # dropout(p=0.5) is identity at inference
        o = jnp.dot(h1.astype(jnp.bfloat16), w2_ref[...],
                    preferred_element_type=jnp.float32)
        o_ref[...] = o + b2_ref[...]
    return kernel


def head_fused(pooled, w1, b1, w2, b2):
    num_layers = len(pooled)
    g = pooled[0].shape[0]
    hp = w1.shape[1]
    op = w2.shape[1]
    in_specs = [_full_spec(xp.shape) for xp in pooled] + [
        _full_spec(w1.shape), _full_spec(b1.shape),
        _full_spec(w2.shape), _full_spec(b2.shape)]
    return pl.pallas_call(
        _make_head_kernel(num_layers, hp),
        grid=(1,),
        in_specs=in_specs,
        out_specs=_full_spec((g, op)),
        out_shape=jax.ShapeDtypeStruct((g, op), jnp.float32),
        compiler_params=_HEAD_PARAMS,
    )(*pooled, w1, b1, w2, b2)


# ----------------------------------------------------------------------------
# JAX glue: knn graph, dense adjacency, degree, per-graph top-k (dynamic topology)
# ----------------------------------------------------------------------------
def knn_edge_index(pos, n_per, k):
    """knn graph within each (equal-sized) graph; edges source(neighbor)->target."""
    n_total = pos.shape[0]
    num_graphs = n_total // n_per
    k = min(k, n_per - 1)
    posg = pos.reshape(num_graphs, n_per, -1)
    d2 = jnp.sum((posg[:, :, None, :] - posg[:, None, :, :]) ** 2, axis=-1)
    d2 = d2 + jnp.eye(n_per, dtype=pos.dtype)[None] * 1e30   # exclude self-loops
    _, nbr = lax.top_k(-d2, k)                               # [B, n_per, k]
    centers = jnp.broadcast_to(jnp.arange(n_per)[None, :, None], nbr.shape)
    offsets = (jnp.arange(num_graphs) * n_per)[:, None, None]
    src = (nbr + offsets).reshape(-1)
    tgt = (centers + offsets).reshape(-1)
    return jnp.stack([src, tgt], axis=0)


def dense_adjacency_int8(edge_index, n_pad):
    src, tgt = edge_index
    adj = jnp.zeros((n_pad, n_pad), jnp.int32).at[tgt, src].add(1)
    return adj.astype(jnp.int8)          # 0/1 counts: exact, 1 byte/elem in HBM


def inverse_degree(edge_index, n_pad):
    tgt = edge_index[1]
    deg = jnp.zeros((n_pad,), jnp.float32).at[tgt].add(1.0)   # O(E), exact
    return (1.0 / jnp.maximum(deg, 1.0)).reshape(n_pad, 1)


def topk_perm(score, n_per, ratio):
    """PyG SAGPooling top-k per graph (equal-sized graphs)."""
    n_total = score.shape[0]
    num_graphs = n_total // n_per
    k = int(math.ceil(ratio * n_per))
    s = score.reshape(num_graphs, n_per)
    _, idx = lax.top_k(s, k)
    perm = (idx + (jnp.arange(num_graphs) * n_per)[:, None]).reshape(-1)
    return perm, k


# ----------------------------------------------------------------------------
# Parameter init (PyTorch-Linear-style uniform bounds), zero-padded to 128 lanes
# ----------------------------------------------------------------------------
def _uniform(key, shape, fan_in):
    bound = 1.0 / math.sqrt(fan_in)
    return jax.random.uniform(key, shape, jnp.float32, -bound, bound)


def _pad2(w, rows, cols):
    out = jnp.zeros((rows, cols), jnp.float32)
    return out.at[: w.shape[0], : w.shape[1]].set(w)


def init_params(key, in_channels, hidden, out_channels, num_layers):
    cp_in = _round_up(in_channels, LANE)
    hp = _round_up(hidden, LANE)
    op = _round_up(out_channels, LANE)
    assert hidden < hp, "need a spare padded lane to stash the pooling score"
    keys = jax.random.split(key, num_layers * 6 + 4)
    ki = iter(keys)
    layers = []
    for i in range(num_layers):
        cin = in_channels if i == 0 else hidden
        cin_p = cp_in if i == 0 else hp
        w_rel = _uniform(next(ki), (cin, hidden), cin)       # GraphConv lin_rel
        b_rel = _uniform(next(ki), (1, hidden), cin)
        w_root = _uniform(next(ki), (cin, hidden), cin)      # GraphConv lin_root (no bias)
        ws_rel = _uniform(next(ki), (hidden, 1), hidden)     # SAGPooling gnn lin_rel
        bs = _uniform(next(ki), (1, 1), hidden)
        ws_root = _uniform(next(ki), (hidden, 1), hidden)    # SAGPooling gnn lin_root
        layers.append(dict(
            w_rel=_pad2(w_rel, cin_p, hp).astype(jnp.bfloat16),
            w_root=_pad2(w_root, cin_p, hp).astype(jnp.bfloat16),
            b_rel=_pad2(b_rel, 1, hp),
            ws_rel=_pad2(ws_rel, hp, LANE).astype(jnp.bfloat16),
            ws_root=_pad2(ws_root, hp, LANE).astype(jnp.bfloat16),
            bs=_pad2(bs, 1, LANE),
        ))
    fan1 = hidden * num_layers
    w1 = _uniform(next(ki), (fan1, hidden), fan1)
    b1 = _uniform(next(ki), (1, hidden), fan1)
    w1p = jnp.zeros((hp * num_layers, hp), jnp.float32)
    for l in range(num_layers):   # place each layer's hidden block at l*hp
        w1p = w1p.at[l * hp: l * hp + hidden, :hidden].set(
            w1[l * hidden:(l + 1) * hidden, :])
    w2 = _uniform(next(ki), (hidden, out_channels), hidden)
    b2 = _uniform(next(ki), (1, out_channels), hidden)
    return {
        "layers": layers,
        "lin1_w": w1p.astype(jnp.bfloat16),
        "lin1_b": _pad2(b1, 1, hp),
        "lin2_w": _pad2(w2, hp, op).astype(jnp.bfloat16),
        "lin2_b": _pad2(b2, 1, op),
        "dims": dict(cp_in=cp_in, hp=hp, op=op, out=out_channels, score_col=hp - 1),
    }


# ----------------------------------------------------------------------------
# Forward pass (mirrors SAGClassifer.forward, inference)
# ----------------------------------------------------------------------------
def sag_classifier_forward(params, x, pos, *, n_per, num_graphs, num_layers, ratio,
                           start_k=6, k_increment=2):
    dims = params["dims"]
    hp, score_col = dims["hp"], dims["score_col"]
    n = x.shape[0]
    # pad input features to 128 lanes, bf16 for the MXU (zero padding is exact)
    x_cur = jnp.zeros((n, dims["cp_in"]), jnp.float32).at[:, : x.shape[1]].set(x)
    x_cur = x_cur.astype(jnp.bfloat16)

    edge_index = knn_edge_index(pos, n_per, start_k)
    pooled = []
    for i in range(num_layers):
        p = params["layers"][i]
        n = x_cur.shape[0]
        n_pad, row_tile = _pad_and_tile(n)
        a_i8 = dense_adjacency_int8(edge_index, n_pad)
        inv_deg = inverse_degree(edge_index, n_pad)
        x_in = jnp.zeros((n_pad, x_cur.shape[1]), jnp.bfloat16).at[:n].set(x_cur)

        # relu(GraphConv_mean) -> tanh(score GraphConv_add) -> x*score
        xs_pad = fused_layer(a_i8, x_in, inv_deg, p,
                             row_tile=row_tile, score_col=score_col)
        xs = xs_pad[:n]
        score = xs[:, score_col].astype(jnp.float32)   # stashed lane; tanh monotone

        # SAGPooling top-k per graph + gather (dynamic topology: plain JAX)
        perm, k_sel = topk_perm(score, n_per, ratio)
        x_cur = xs[perm]                               # (G*k_sel, HP) bf16, pre-scaled
        pos = pos[perm]
        n_per = k_sel

        # gmp input: graphs are contiguous equal-sized blocks after top-k
        pooled.append(x_cur.reshape(num_graphs, k_sel, hp))

        # KnnEdges: rebuild edge_index on pooled positions
        edge_index = knn_edge_index(pos, n_per, start_k + i * k_increment)

    # gmp + JumpingKnowledge('cat') + lin1 + relu + dropout(id) + lin2, one kernel
    logits = head_fused(pooled, params["lin1_w"], params["lin1_b"],
                        params["lin2_w"], params["lin2_b"])
    return logits[:, : dims["out"]]


# ----------------------------------------------------------------------------
if __name__ == "__main__":
    key = jax.random.PRNGKey(0)
    num_graphs, n_per = 2, 16
    in_channels, hidden, out_channels = 8, 32, 4
    num_layers, pool_ratio = 2, 0.5

    k_x, k_pos, k_params = jax.random.split(key, 3)
    n_nodes = num_graphs * n_per
    x = jax.random.normal(k_x, (n_nodes, in_channels), jnp.float32)
    pos = jax.random.uniform(k_pos, (n_nodes, 2), jnp.float32)

    params = init_params(k_params, in_channels, hidden, out_channels, num_layers)

    logits = sag_classifier_forward(
        params, x, pos,
        n_per=n_per, num_graphs=num_graphs,
        num_layers=num_layers, ratio=pool_ratio,
    )
    logits = jax.block_until_ready(logits)
    assert logits.shape == (num_graphs, out_channels)
    assert bool(jnp.all(jnp.isfinite(logits)))
    print("KERNEL_OK")
</pallas_src>

<mosaic_0001>
module attributes {stable_mosaic.version = 11 : i64} {
  func.func @kernel(%arg0: i32, %arg1: memref<32x32xi8, #tpu.memory_space<vmem>>, %arg2: memref<32x128xbf16, #tpu.memory_space<vmem>>, %arg3: memref<32x1xf32, #tpu.memory_space<vmem>>, %arg4: memref<128x128xbf16, #tpu.memory_space<vmem>>, %arg5: memref<128x128xbf16, #tpu.memory_space<vmem>>, %arg6: memref<1x128xf32, #tpu.memory_space<vmem>>, %arg7: memref<128x128xbf16, #tpu.memory_space<vmem>>, %arg8: memref<32x128xbf16, #tpu.memory_space<vmem>>, %arg9: memref<32x128xbf16, #tpu.memory_space<vmem>>) attributes {dimension_semantics = [#tpu.dimension_semantics<parallel>], iteration_bounds = array<i64: 1>, scalar_prefetch = 0 : i64, scratch_operands = 0 : i64, tpu.core_type = #tpu.core_type<tc>, window_params = [{transform_indices = @transform_0, window_bounds = array<i64: 32, 32>}, {pipeline_mode = #tpu.pipeline_mode<synchronous>, transform_indices = @transform_1, window_bounds = array<i64: 32, 128>}, {transform_indices = @transform_2, window_bounds = array<i64: 32, 1>}, {pipeline_mode = #tpu.pipeline_mode<synchronous>, transform_indices = @transform_3, window_bounds = array<i64: 128, 128>}, {pipeline_mode = #tpu.pipeline_mode<synchronous>, transform_indices = @transform_4, window_bounds = array<i64: 128, 128>}, {pipeline_mode = #tpu.pipeline_mode<synchronous>, transform_indices = @transform_5, window_bounds = array<i64: 1, 128>}, {pipeline_mode = #tpu.pipeline_mode<synchronous>, transform_indices = @transform_6, window_bounds = array<i64: 128, 128>}, {transform_indices = @transform_7, window_bounds = array<i64: 32, 128>}, {transform_indices = @transform_8, window_bounds = array<i64: 32, 128>}]} {
    %c0 = arith.constant 0 : index
    %c0_0 = arith.constant 0 : index
    %0 = vector.load %arg1[%c0, %c0_0] : memref<32x32xi8, #tpu.memory_space<vmem>>, vector<32x32xi8>
    %1 = arith.sitofp %0 : vector<32x32xi8> to vector<32x32xbf16>
    %c0_1 = arith.constant 0 : index
    %c0_2 = arith.constant 0 : index
    %2 = vector.load %arg2[%c0_1, %c0_2] : memref<32x128xbf16, #tpu.memory_space<vmem>>, vector<32x128xbf16>
    %cst = arith.constant dense<0.000000e+00> : vector<32x128xf32>
    %3 = tpu.matmul %1, %2, %cst {dimension_numbers = #tpu.dot_dimension_numbers<[1], [0], [0], [1], [0, 0, 1, 1], [], []>} : vector<32x32xbf16>, vector<32x128xbf16>, vector<32x128xf32> -> vector<32x128xf32>
    %c0_3 = arith.constant 0 : index
    %c0_4 = arith.constant 0 : index
    %4 = vector.load %arg3[%c0_3, %c0_4] : memref<32x1xf32, #tpu.memory_space<vmem>>, vector<32x1xf32>
    %5 = vector.broadcast %4 : vector<32x1xf32> to vector<32x128xf32>
    %6 = arith.mulf %3, %5 : vector<32x128xf32>
    %c32_i32 = arith.constant 32 : i32
    %7 = arith.muli %arg0, %c32_i32 : i32
    %8 = tpu.assume_multiple %7, 8 : i32
    %9 = arith.index_cast %8 : i32 to index
    %c0_5 = arith.constant 0 : index
    %10 = vector.load %arg2[%9, %c0_5] : memref<32x128xbf16, #tpu.memory_space<vmem>>, vector<32x128xbf16>
    %11 = arith.truncf %6 : vector<32x128xf32> to vector<32x128xbf16>
    %c0_6 = arith.constant 0 : index
    %c0_7 = arith.constant 0 : index
    %12 = vector.load %arg4[%c0_6, %c0_7] : memref<128x128xbf16, #tpu.memory_space<vmem>>, vector<128x128xbf16>
    %cst_8 = arith.constant dense<0.000000e+00> : vector<32x128xf32>
    %13 = tpu.matmul %11, %12, %cst_8 {dimension_numbers = #tpu.dot_dimension_numbers<[1], [0], [0], [1], [0, 0, 1, 1], [], []>} : vector<32x128xbf16>, vector<128x128xbf16>, vector<32x128xf32> -> vector<32x128xf32>
    %c0_9 = arith.constant 0 : index
    %c0_10 = arith.constant 0 : index
    %14 = vector.load %arg5[%c0_9, %c0_10] : memref<128x128xbf16, #tpu.memory_space<vmem>>, vector<128x128xbf16>
    %cst_11 = arith.constant dense<0.000000e+00> : vector<32x128xf32>
    %15 = tpu.matmul %10, %14, %cst_11 {dimension_numbers = #tpu.dot_dimension_numbers<[1], [0], [0], [1], [0, 0, 1, 1], [], []>} : vector<32x128xbf16>, vector<128x128xbf16>, vector<32x128xf32> -> vector<32x128xf32>
    %16 = arith.addf %13, %15 : vector<32x128xf32>
    %c0_12 = arith.constant 0 : index
    %c0_13 = arith.constant 0 : index
    %17 = vector.load %arg6[%c0_12, %c0_13] : memref<1x128xf32, #tpu.memory_space<vmem>>, vector<1x128xf32>
    %18 = vector.broadcast %17 : vector<1x128xf32> to vector<32x128xf32>
    %19 = arith.addf %16, %18 : vector<32x128xf32>
    %cst_14 = arith.constant 0.000000e+00 : f32
    %20 = vector.broadcast %cst_14 : f32 to vector<32x128xf32>
    %21 = arith.maximumf %19, %20 : vector<32x128xf32>
    %22 = arith.truncf %21 : vector<32x128xf32> to vector<32x128xbf16>
    %c0_15 = arith.constant 0 : index
    %c0_16 = arith.constant 0 : index
    %23 = vector.load %arg8[%c0_15, %c0_16] : memref<32x128xbf16, #tpu.memory_space<vmem>>, vector<32x128xbf16>
    tpu.vector_store %arg8[%c0_15, %c0_16], %22 {strides = array<i32>} : memref<32x128xbf16, #tpu.memory_space<vmem>>, vector<32x128xbf16>,
    %c0_17 = arith.constant 0 : index
    %c0_18 = arith.constant 0 : index
    %24 = vector.load %arg7[%c0_17, %c0_18] : memref<128x128xbf16, #tpu.memory_space<vmem>>, vector<128x128xbf16>
    %cst_19 = arith.constant dense<0.000000e+00> : vector<32x128xf32>
    %25 = tpu.matmul %22, %24, %cst_19 {dimension_numbers = #tpu.dot_dimension_numbers<[1], [0], [0], [1], [0, 0, 1, 1], [], []>} : vector<32x128xbf16>, vector<128x128xbf16>, vector<32x128xf32> -> vector<32x128xf32>
    %26 = arith.truncf %25 : vector<32x128xf32> to vector<32x128xbf16>
    %c0_20 = arith.constant 0 : index
    %c0_21 = arith.constant 0 : index
    %27 = vector.load %arg9[%c0_20, %c0_21] : memref<32x128xbf16, #tpu.memory_space<vmem>>, vector<32x128xbf16>
    tpu.vector_store %arg9[%c0_20, %c0_21], %26 {strides = array<i32>} : memref<32x128xbf16, #tpu.memory_space<vmem>>, vector<32x128xbf16>,
    return
  }
  func.func @transform_0(%arg0: i32) -> (i32, i32) {
    %c0_i32 = arith.constant 0 : i32
    %c0_i32_0 = arith.constant 0 : i32
    return %arg0, %c0_i32 : i32, i32
  }
  func.func @transform_1(%arg0: i32) -> (i32, i32) {
    %c0_i32 = arith.constant 0 : i32
    %c0_i32_0 = arith.constant 0 : i32
    %c0_i32_1 = arith.constant 0 : i32
    return %c0_i32, %c0_i32_0 : i32, i32
  }
  func.func @transform_2(%arg0: i32) -> (i32, i32) {
    %c0_i32 = arith.constant 0 : i32
    %c0_i32_0 = arith.constant 0 : i32
    return %arg0, %c0_i32 : i32, i32
  }
  func.func @transform_3(%arg0: i32) -> (i32, i32) {
    %c0_i32 = arith.constant 0 : i32
    %c0_i32_0 = arith.constant 0 : i32
    %c0_i32_1 = arith.constant 0 : i32
    return %c0_i32, %c0_i32_0 : i32, i32
  }
  func.func @transform_4(%arg0: i32) -> (i32, i32) {
    %c0_i32 = arith.constant 0 : i32
    %c0_i32_0 = arith.constant 0 : i32
    %c0_i32_1 = arith.constant 0 : i32
    return %c0_i32, %c0_i32_0 : i32, i32
  }
  func.func @transform_5(%arg0: i32) -> (i32, i32) {
    %c0_i32 = arith.constant 0 : i32
    %c0_i32_0 = arith.constant 0 : i32
    %c0_i32_1 = arith.constant 0 : i32
    return %c0_i32, %c0_i32_0 : i32, i32
  }
  func.func @transform_6(%arg0: i32) -> (i32, i32) {
    %c0_i32 = arith.constant 0 : i32
    %c0_i32_0 = arith.constant 0 : i32
    %c0_i32_1 = arith.constant 0 : i32
    return %c0_i32, %c0_i32_0 : i32, i32
  }
  func.func @transform_7(%arg0: i32) -> (i32, i32) {
    %c0_i32 = arith.constant 0 : i32
    %c0_i32_0 = arith.constant 0 : i32
    return %arg0, %c0_i32 : i32, i32
  }
  func.func @transform_8(%arg0: i32) -> (i32, i32) {
    %c0_i32 = arith.constant 0 : i32
    %c0_i32_0 = arith.constant 0 : i32
    return %arg0, %c0_i32 : i32, i32
  }
}

</mosaic_0001>

<bundles_post_ra>
// kernel: tpu_custom_call.1
= control target key start
LH: loop header
LB: loop body
LE: loop exit
PB: predicated region body
PF: predicated region fallthrough
CT: control target
= control target key end

     0   :  { %14 = vsyncpa [#allocation3], 0  ;;  %s1126_s0 = inlined_call_operand.vmem [shape: s8[32,32], index: 0, kind: input, shape index: {}]   ;;  %s1127_s1 = inlined_call_operand.vmem [shape: bf16[32,128], index: 1, kind: input, shape index: {}]   ;;  %s1128_s2 = inlined_call_operand.vmem [shape: f32[32,1], index: 2, kind: input, shape index: {}]   ;;  %s1129_s3 = inlined_call_operand.hbm [shape: bf16[128,128], index: 3, kind: input, shape index: {}]   ;;  %s1130_s4 = inlined_call_operand.hbm [shape: bf16[128,128], index: 4, kind: input, shape index: {}]   ;;  %s1131_s5 = inlined_call_operand.vmem [shape: f32[1,128], index: 5, kind: input, shape index: {}]   ;;  %s1132_s6 = inlined_call_operand.hbm [shape: bf16[128,128], index: 6, kind: input, shape index: {}]   ;;  %s1133_s7 = inlined_call_operand.hbm [shape: bf16[32,128], index: 7, kind: output, shape index: {0}]   ;;  %s1134_s8 = inlined_call_operand.hbm [shape: bf16[32,128], index: 8, kind: output, shape index: {1}]  }
   0x1   :  { %15 = vsyncpa [#allocation6], 0 }
   0x2   :  { %16 = vsyncpa [#allocation4], 0 }
   0x3   :  { %17 = vsyncpa [#allocation10], 0  ;;  %s959_s27 = smov [#allocation5]   ;;  %s960_s29 = smov [#allocation2]  }
   0x4   :  { %s41_s28 = sshll.u32 %s959_s27, 4  ;;  %s29_s30 = sshll.u32 %s960_s29, 4  ;;  %s42_s28 = int_to_ptr.vmem [resolvable:$true] %s41_s28  ;;  %s1012_s30 = int_to_ptr.vmem [resolvable:$true] %s29_s30 }
   0x5   :  { %s841_s11 = scalar_lea.hbm %s1130_s4, 1024 }
   0x6   :  { %p842_p0 = scmp.ne.s32.totalorder %s1130_s4, %s841_s11  ;;  %p845_p1 = scmp.lt.u32.totalorder %s841_s11, %s1130_s4 }
   0x8   :  { %p847_p2 = pnand %p845_p1, %p842_p0 }
   0xa   :  { %850 = shalt.err (!%p847_p2)
}
   0xb   :  { %s851_s16 = scalar_lea.vmem %s42_s28, 1024  ;;  %p856_p4 = scmp.lt.s32.totalorder %s42_s28, %s42_s28 }
   0xc   :  { %p852_p3 = scmp.ne.s32.totalorder %s42_s28, %s851_s16  ;;  %p857_p5 = scmp.lt.s32.totalorder %s851_s16, %s851_s16 }
   0xe   :  { %p858_p6 = por %p857_p5, %p856_p4 }
  0x10   :  { %p859_p7 = pnand %p858_p6, %p852_p3 }
  0x12   :  { %862 = shalt.err (!%p859_p7)
}
  0x13   :  { %s961_s17 = smov 64   ;;  %s962_s18 = smov 4  }
  0x14   :  { %47 = dma.hbm_to_vmem [thread:$0]  %s1130_s4, 1024, %s42_s28, [#allocation6], %s961_s17, %s961_s17, %s962_s18  }
  0x15   :  { %s863_s23 = scalar_lea.hbm %s1129_s3, 1024 }
  0x16   :  { %p864_p8 = scmp.ne.s32.totalorder %s1129_s3, %s863_s23  ;;  %p867_p9 = scmp.lt.u32.totalorder %s863_s23, %s1129_s3 }
  0x18   :  { %p869_p10 = pnand %p867_p9, %p864_p8 }
  0x1a   :  { %872 = shalt.err (!%p869_p10)
}
  0x1b   :  { %s873_s29 = scalar_lea.vmem %s1012_s30, 1024  ;;  %p878_p12 = scmp.lt.s32.totalorder %s1012_s30, %s1012_s30 }
  0x1c   :  { %p874_p11 = scmp.ne.s32.totalorder %s1012_s30, %s873_s29  ;;  %p879_p13 = scmp.lt.s32.totalorder %s873_s29, %s873_s29 }
  0x1e   :  { %p880_p0 = por %p879_p13, %p878_p12 }
  0x20   :  { %p881_p1 = pnand %p880_p0, %p874_p11 }
  0x22   :  { %884 = shalt.err (!%p881_p1)
}
  0x23   :  { %35 = dma.hbm_to_vmem [thread:$0]  %s1129_s3, 1024, %s1012_s30, [#allocation3], %s961_s17, %s961_s17, %s962_s18  }
  0x24   :  { %s963_s9 = smov [#allocation7]   ;;  %s885_s13 = scalar_lea.hbm %s1132_s6, 1024 }
  0x25   :  { %s55_s10 = sshll.u32 %s963_s9, 4  ;;  %p886_p2 = scmp.ne.s32.totalorder %s1132_s6, %s885_s13  ;;  %s56_s10 = int_to_ptr.vmem [resolvable:$true] %s55_s10 }
  0x26   :  { %p889_p3 = scmp.lt.u32.totalorder %s885_s13, %s1132_s6 }
  0x28   :  { %p891_p4 = pnand %p889_p3, %p886_p2 }
  0x2a   :  { %894 = shalt.err (!%p891_p4)
}
  0x2b   :  { %s895_s20 = scalar_lea.vmem %s56_s10, 1024  ;;  %p900_p6 = scmp.lt.s32.totalorder %s56_s10, %s56_s10 }
  0x2c   :  { %p896_p5 = scmp.ne.s32.totalorder %s56_s10, %s895_s20  ;;  %p901_p7 = scmp.lt.s32.totalorder %s895_s20, %s895_s20 }
  0x2e   :  { %p902_p8 = por %p901_p7, %p900_p6 }
  0x30   :  { %p903_p9 = pnand %p902_p8, %p896_p5 }
  0x32   :  { %906 = shalt.err (!%p903_p9)
}
  0x33   :  { %61 = dma.hbm_to_vmem [thread:$0]  %s1132_s6, 1024, %s56_s10, [#allocation6], %s961_s17, %s961_s17, %s962_s18  }
  0x34   :  { %951 = dma.done.wait [#allocation3], 1024  }
  0x35   :  { %952 = vsyncadd [#allocation3], 4294966272 }
  0x36   :  { %953 = dma.done.wait [#allocation6], 2048  }
  0x37   :  { %954 = vsyncadd [#allocation6], 4294965248  ;;  %v964_v0 = vmov 0   ;;  %v813_v1 = vld [vmem:[%s1127_s1] sm:$0xff]   ;;  %v814_v2 = vld [vmem:[%s1127_s1 + $0x8] sm:$0xff]   ;;  %vm91_vm0 = vcmask 261120  }
  0x38   :  { %811 = vset.pattern.permute.xlu0 %v964_v0  ;;  %812 = vset.pattern.permute.xlu1 %v964_v0  ;;  %v72_v3 = vld [vmem:[%s1126_s0] sm:$0xff]  ;;  %v149_v5 = vld [vmem:[%s1128_s2 + $0x10] sm:$0xff]  ;;  %v148_v7 = vld [vmem:[%s1128_s2 + $0x8] sm:$0xff]  ;;  %s965_s15 = smov [#allocation8]  }
  0x39   :  { %731 = vmatprep.subr.bf16.mxu0 %v813_v1  ;;  %v147_v4 = vld [vmem:[%s1128_s2] sm:$0xff]  ;;  %v73_v6 = vunpack.c.l.s8.bf16 %v72_v3  ;;  %v150_v8 = vld [vmem:[%s1128_s2 + $0x18] sm:$0xff]  ;;  %163 = vperm.xlu1 %812, %v149_v5   ;;  %v816_v10 = vld [vmem:[#allocation5 + $0x8] sm:$0xff]   ;;  %v74_v11 = vunpack.c.h.s8.bf16 %v72_v3 }
  0x3a   :  { %732 = vmatpush3.bf16.msra.mxu0 %v813_v1  ;;  %153 = vperm.xlu0 %811, %v147_v4   ;;  %v815_v9 = vld [vmem:[#allocation5] sm:$0xff]   ;;  %v817_v12 = vld [vmem:[#allocation5 + $0x10] sm:$0xff]   ;;  %v818_v14 = vld [vmem:[#allocation5 + $0x18] sm:$0xff]  }
  0x3b   :  { %733 = vmatprep.subr.bf16.mxu0 %v814_v2  ;;  %735 = vmatprep.mubr.msk.bf16.mxu0 %vm91_vm0, %v73_v6  ;;  %v823_v13 = vld [vmem:[%s1127_s1] sm:$0xff]   ;;  %v820_v16 = vld [vmem:[#allocation5 + $0x28] sm:$0xff]   ;;  %v821_v17 = vld [vmem:[#allocation5 + $0x30] sm:$0xff]  }
  0x3c   :  { %739 = vmatprep.subr.bf16.mxu1 %v815_v9  ;;  %755 = vmatprep.mubr.bf16.mxu1 %v823_v13  ;;  %v819_v15 = vld [vmem:[#allocation5 + $0x20] sm:$0xff]   ;;  %v822_v18 = vld [vmem:[#allocation5 + $0x38] sm:$0xff]   ;;  %v825_v20 = vld [vmem:[%s1127_s1 + $0x8] sm:$0xff]  }
  0x3d   :  { %168 = vperm.xlu1 %812, %v150_v8   ;;  %740 = vmatpush3.bf16.msra.mxu1 %v815_v9  ;;  %v824_v19 = vld [vmem:[#allocation2] sm:$0xff]   ;;  %v826_v21 = vld [vmem:[#allocation2 + $0x8] sm:$0xff]   ;;  %v827_v22 = vld [vmem:[#allocation2 + $0x10] sm:$0xff]  }
  0x3e   :  { %734 = vmatpush3.bf16.msra.mxu0 %v814_v2  ;;  %158 = vperm.xlu0 %811, %v148_v7   ;;  %v828_v23 = vld [vmem:[#allocation2 + $0x18] sm:$0xff]   ;;  %v829_v24 = vld [vmem:[#allocation2 + $0x20] sm:$0xff]   ;;  %v830_v25 = vld [vmem:[#allocation2 + $0x28] sm:$0xff]  }
  0x3f   :  { %741 = vmatprep.subr.bf16.mxu1 %v816_v10  ;;  %v831_v26 = vld [vmem:[#allocation2 + $0x30] sm:$0xff]   ;;  %v832_v27 = vld [vmem:[#allocation2 + $0x38] sm:$0xff]   ;;  %v833_v28 = vld [vmem:[#allocation7] sm:$0xff]  }
  0x40   :  { %v834_v29 = vld [vmem:[#allocation7 + $0x8] sm:$0xff]   ;;  %779 = vmatprep.subr.bf16.mxu0 %v833_v28  ;;  %v835_v30 = vld [vmem:[#allocation7 + $0x10] sm:$0xff]   ;;  %v836_v31 = vld [vmem:[#allocation7 + $0x18] sm:$0xff]  }
  0x41   :  { %736 = vmatmul.mubr.msk.bf16.vlgmr.msra.gmra.mrb[0].mxu0 %vm91_vm0, %v74_v11  ;;  %742 = vmatpush3.bf16.msra.mxu1 %v816_v10  ;;  %v837_v32 = vld [vmem:[#allocation7 + $0x20] sm:$0xff]   ;;  %v838_v33 = vld [vmem:[#allocation7 + $0x28] sm:$0xff]   ;;  %v839_v48 = vld [vmem:[#allocation7 + $0x30] sm:$0xff]  }
  0x42   :  { %743 = vmatprep.subr.bf16.mxu1 %v817_v12  ;;  %780 = vmatpush3.bf16.msra.mxu0 %v833_v28  ;;  %v840_v49 = vld [vmem:[#allocation7 + $0x38] sm:$0xff]   ;;  %v650_v50 = vld [vmem:[%s1131_s5] ss:$0 sm:$0xff]  ;;  %s597_s5 = sshll.u32 %s965_s15, 4  ;;  %s598_s5 = int_to_ptr.vmem [resolvable:$true] %s597_s5 }
  0x43   :  { %781 = vmatprep.subr.bf16.mxu0 %v834_v29  ;;  %s907_s16 = scalar_lea.vmem %s598_s5, 256  ;;  %p912_p11 = scmp.lt.s32.totalorder %s598_s5, %s598_s5 }
  0x44   :  { %p908_p10 = scmp.ne.s32.totalorder %s598_s5, %s907_s16  ;;  %p913_p12 = scmp.lt.s32.totalorder %s907_s16, %s907_s16 }
  0x45   :  { %744 = vmatpush3.bf16.msra.mxu1 %v817_v12 }
  0x46   :  { %745 = vmatprep.subr.bf16.mxu1 %v818_v14  ;;  %782 = vmatpush3.bf16.msra.mxu0 %v834_v29  ;;  %p914_p13 = por %p913_p12, %p912_p11 }
  0x47   :  { %783 = vmatprep.subr.bf16.mxu0 %v835_v30 }
  0x48   :  { %p915_p0 = pnand %p914_p13, %p908_p10 }
  0x49   :  { %746 = vmatpush3.bf16.msra.mxu1 %v818_v14 }
  0x4a   :  { %747 = vmatprep.subr.bf16.mxu1 %v819_v15  ;;  %784 = vmatpush3.bf16.msra.mxu0 %v835_v30 }
  0x4b   :  { %785 = vmatprep.subr.bf16.mxu0 %v836_v31 }
  0x4d   :  { %748 = vmatpush3.bf16.msra.mxu1 %v819_v15 }
  0x4e   :  { %749 = vmatprep.subr.bf16.mxu1 %v820_v16  ;;  %786 = vmatpush3.bf16.msra.mxu0 %v836_v31 }
  0x4f   :  { %787 = vmatprep.subr.bf16.mxu0 %v837_v32 }
  0x51   :  { %750 = vmatpush3.bf16.msra.mxu1 %v820_v16 }
  0x52   :  { %751 = vmatprep.subr.bf16.mxu1 %v821_v17  ;;  %788 = vmatpush3.bf16.msra.mxu0 %v837_v32 }
  0x53   :  { %789 = vmatprep.subr.bf16.mxu0 %v838_v33 }
  0x55   :  { %752 = vmatpush3.bf16.msra.mxu1 %v821_v17 }
  0x56   :  { %753 = vmatprep.subr.bf16.mxu1 %v822_v18  ;;  %790 = vmatpush3.bf16.msra.mxu0 %v838_v33 }
  0x57   :  { %791 = vmatprep.subr.bf16.mxu0 %v839_v48 }
  0x59   :  { %754 = vmatpush3.bf16.msra.mxu1 %v822_v18 }
  0x5a   :  { %759 = vmatprep.subr.bf16.mxu1 %v824_v19  ;;  %792 = vmatpush3.bf16.msra.mxu0 %v839_v48 }
  0x5b   :  { %793 = vmatprep.subr.bf16.mxu0 %v840_v49 }
  0x5c   :  { %756 = vmatmul.mubr.bf16.vlgmr.msra.gmra.mrb[0].mxu1 %v825_v20 }
  0x5d   :  { %760 = vmatpush3.bf16.msra.mxu1 %v824_v19 }
  0x5e   :  { %761 = vmatprep.subr.bf16.mxu1 %v826_v21  ;;  %794 = vmatpush3.bf16.msra.mxu0 %v840_v49 }
  0x61   :  { %762 = vmatpush3.bf16.msra.mxu1 %v826_v21 }
  0x62   :  { %763 = vmatprep.subr.bf16.mxu1 %v827_v22 }
  0x65   :  { %764 = vmatpush3.bf16.msra.mxu1 %v827_v22 }
  0x66   :  { %765 = vmatprep.subr.bf16.mxu1 %v828_v23 }
  0x69   :  { %766 = vmatpush3.bf16.msra.mxu1 %v828_v23 }
  0x6a   :  { %767 = vmatprep.subr.bf16.mxu1 %v829_v24 }
  0x6d   :  { %768 = vmatpush3.bf16.msra.mxu1 %v829_v24 }
  0x6e   :  { %769 = vmatprep.subr.bf16.mxu1 %v830_v25 }
  0x71   :  { %770 = vmatpush3.bf16.msra.mxu1 %v830_v25 }
  0x72   :  { %771 = vmatprep.subr.bf16.mxu1 %v831_v26 }
  0x75   :  { %772 = vmatpush3.bf16.msra.mxu1 %v831_v26 }
  0x76   :  { %773 = vmatprep.subr.bf16.mxu1 %v832_v27 }
  0x79   :  { %774 = vmatpush3.bf16.msra.mxu1 %v832_v27 }
  0xb8   :  { %v164_v34 = vpop.permute.xlu1 %163 }
  0xb9   :  { %v154_v35 = vpop.permute.xlu0 %153 }
  0xbc   :  { %v169_v38 = vpop.permute.xlu1 %168 }
  0xbd   :  { %v159_v40 = vpop.permute.xlu0 %158 }
 0x114   :  { %v737_v36 = vpop.f32.mrb[0].mxu0 }
 0x115   :  { %v132_v37 = vpop.f32.mrb[1].mxu0  ;;  %v173_v41 = vmul.f32 %v737_v36, %v164_v34 }
 0x116   :  { %v738_v39 = vpop.f32.mrb[2].mxu0  ;;  %v171_v44 = vmul.f32 %v154_v35, %v132_v37 }
 0x117   :  { %v174_v42 = vmul.f32 %v738_v39, %v169_v38  ;;  %v135_v43 = vpop.f32.mrb[3].mxu0 }
 0x118   :  { %v172_v45 = vmul.f32 %v159_v40, %v135_v43 }
 0x119   :  { %v185_v46 = vpack.c.bf16 %v174_v42, %v173_v41 }
 0x11a   :  { %v184_v47 = vpack.c.bf16 %v172_v45, %v171_v44 }
 0x11c   :  { %775 = vmatprep.mubr.bf16.mxu1 %v184_v47 }
 0x11d   :  { %776 = vmatmul.mubr.bf16.vlgmr.msra.gmra.mrb[0].mxu1 %v185_v46 }
 0x1f0   :  { %v777_v51 = vpop.f32.mrb[0].mxu1 }
 0x1f1   :  { %v433_v52 = vadd.f32 %v777_v51, %v650_v50  ;;  %v409_v53 = vpop.f32.mrb[1].mxu1 }
 0x1f2   :  { %v431_v54 = vadd.f32 %v650_v50, %v409_v53  ;;  %v778_v55 = vpop.f32.mrb[2].mxu1 }
 0x1f3   :  { %v434_v56 = vadd.f32 %v778_v55, %v650_v50  ;;  %v412_v57 = vpop.f32.mrb[3].mxu1  ;;  %v437_v59 = vmax.f32 %v433_v52, 0.0 }
 0x1f4   :  { %v432_v58 = vadd.f32 %v650_v50, %v412_v57  ;;  %v435_v61 = vmax.f32 %v431_v54, 0.0 }
 0x1f5   :  { %v438_v60 = vmax.f32 %v434_v56, 0.0 }
 0x1f6   :  { %v436_v62 = vmax.f32 %v432_v58, 0.0 }
 0x1f7   :  { %v440_v63 = vpack.c.bf16 %v438_v60, %v437_v59 }
 0x1f8   :  { %v439_v0 = vpack.c.bf16 %v436_v62, %v435_v61 }
 0x1f9   :  { %695 = vst [vmem:[#allocation8 + $0x8] sm:$0xff] %v440_v63  }
 0x1fa   :  { %679 = vst [vmem:[#allocation8] sm:$0xff] %v439_v0   ;;  %795 = vmatprep.mubr.bf16.mxu0 %v439_v0 }
 0x1fb   :  { %796 = vmatmul.mubr.bf16.vlgmr.msra.gmra.mrb[4].mxu0 %v440_v63 }
 0x1fc   :  { %918 = shalt.err (!%p915_p0)
}
 0x1fd   :  { %s919_s3 = scalar_lea.hbm %s1133_s7, 256 }
 0x1fe   :  { %p920_p1 = scmp.ne.s32.totalorder %s1133_s7, %s919_s3  ;;  %p923_p2 = scmp.lt.u32.totalorder %s919_s3, %s1133_s7 }
 0x200   :  { %p925_p3 = pnand %p923_p2, %p920_p1 }
 0x202   :  { %928 = shalt.err (!%p925_p3)
}
 0x203   :  { %603 = dma.vmem_to_hbm [thread:$0]  %s598_s5, 256, %s1133_s7, [#allocation4], %s961_s17, %s961_s17, %s962_s18  }
 0x204   :  { %s966_s26 = smov [#allocation9]  }
 0x205   :  { %s609_s6 = sshll.u32 %s966_s26, 4  ;;  %s610_s6 = int_to_ptr.vmem [resolvable:$true] %s609_s6 }
 0x206   :  { %s929_s27 = scalar_lea.vmem %s610_s6, 256  ;;  %p934_p5 = scmp.lt.s32.totalorder %s610_s6, %s610_s6 }
 0x207   :  { %p930_p4 = scmp.ne.s32.totalorder %s610_s6, %s929_s27  ;;  %p935_p6 = scmp.lt.s32.totalorder %s929_s27, %s929_s27 }
 0x209   :  { %p936_p7 = por %p935_p6, %p934_p5 }
 0x20b   :  { %p937_p8 = pnand %p936_p7, %p930_p4 }
 0x2ce   :  { %v797_v1 = vpop.f32.mrb[4].mxu0 }
 0x2cf   :  { %v557_v2 = vpop.f32.mrb[5].mxu0 }
 0x2d0   :  { %v798_v3 = vpop.f32.mrb[6].mxu0 }
 0x2d1   :  { %v693_v4 = vpack.c.bf16 %v798_v3, %v797_v1  ;;  %v560_v5 = vpop.f32.mrb[7].mxu0 }
 0x2d2   :  { %v688_v6 = vpack.c.bf16 %v560_v5, %v557_v2 }
 0x2d3   :  { %696 = vst [vmem:[#allocation9 + $0x8] sm:$0xff] %v693_v4  }
 0x2d4   :  { %689 = vst [vmem:[#allocation9] sm:$0xff] %v688_v6  }
 0x2d5   :  { %940 = shalt.err (!%p937_p8)
}
 0x2d6   :  { %s941_s4 = scalar_lea.hbm %s1134_s8, 256 }
 0x2d7   :  { %p942_p9 = scmp.ne.s32.totalorder %s1134_s8, %s941_s4  ;;  %p945_p10 = scmp.lt.u32.totalorder %s941_s4, %s1134_s8 }
 0x2d9   :  { %p947_p11 = pnand %p945_p10, %p942_p9 }
 0x2db   :  { %950 = shalt.err (!%p947_p11)
}
 0x2dc   :  { %615 = dma.vmem_to_hbm [thread:$0]  %s610_s6, 256, %s1134_s8, [#allocation10], %s961_s17, %s961_s17, %s962_s18  }
 0x2dd   :  { %955 = dma.done.wait [#allocation4], 256  }
 0x2de   :  { %956 = vsyncadd [#allocation4], 4294967040 }
 0x2df   :  { %957 = dma.done.wait [#allocation10], 256  }
 0x2e0   :  { %958 = vsyncadd [#allocation10], 4294967040 }
 0x2e1   :  { %622 = vsyncpa [#allocation3], 1 }
 0x2e2   :  { %623 = vsyncpa [#allocation6], 1 }
 0x2e3   :  { %624 = vsyncpa [#allocation4], 1 }
 0x2e4   :  { %625 = vsyncpa [#allocation10], 1 }

</bundles_post_ra>
